<compile_context>
chip_gen: v6e
topology: v6e:2x2x1
jax: 0.10.0
libtpu: 0.0.40
codegen_flags: <defaults>
</compile_context>

<pallas_src>
import functools

import jax
import jax.numpy as jnp
from jax.experimental import pallas as pl
from jax.experimental.pallas import tpu as pltpu


def _pred_wrong_loss_kernel(pred_ref, tgt_ref, pw_ref,
                            ce_ref, cnt_ref, bce_ref,
                            acc_ce, acc_cnt, acc_bce,
                            *, ignore_index, true_h, tile_h):
    h = pl.program_id(1)

    @pl.when(h == 0)
    def _init():
        acc_ce[...] = jnp.zeros_like(acc_ce)
        acc_cnt[...] = jnp.zeros_like(acc_cnt)
        acc_bce[...] = jnp.zeros_like(acc_bce)

    pred = pred_ref[...].astype(jnp.float32)      # (C, TILE_H, W) class logits
    tgt = tgt_ref[...]                            # (TILE_H, W) int32 labels
    pw = pw_ref[...].astype(jnp.float32)          # (TILE_H, W) pred_wrong logits

    C = pred.shape[0]
    pix_shape = tgt.shape                         # (TILE_H, W)

    # Mask for a partial last H tile (emitted only when tiling is ragged).
    if true_h % tile_h != 0:
        rows = h * tile_h + jax.lax.broadcasted_iota(jnp.int32, pix_shape, 0)
        row_ok = rows < true_h
    else:
        row_ok = None

    valid = tgt != ignore_index
    if row_ok is not None:
        valid = jnp.logical_and(valid, row_ok)

    # ---- softmax cross-entropy (all reductions over leading C axis: VPU) ----
    m = jnp.max(pred, axis=0)                                       # (TH, W)
    sumexp = jnp.sum(jnp.exp(pred - m[None]), axis=0)
    lse = m + jnp.log(sumexp)
    cidx = jax.lax.broadcasted_iota(jnp.int32, pred.shape, 0)       # (C, TH, W)
    picked = jnp.sum(jnp.where(cidx == tgt[None], pred, 0.0), axis=0)
    ce = jnp.where(valid, lse - picked, 0.0)

    # ---- wrong mask: first-occurrence argmax over C (torch tie rule) ----
    amax = jnp.min(jnp.where(pred == m[None], cidx, jnp.int32(C)), axis=0)
    wrong = jnp.logical_and(amax != tgt, valid)

    # ---- BCE(sigmoid(pw), wrong) via log-sigmoid; PyTorch-style -100 clamp ---
    log1pe = jnp.log1p(jnp.exp(-jnp.abs(pw)))
    log_p = jnp.where(pw >= 0, 0.0, pw) - log1pe        # log(sigmoid(pw))
    log_1mp = jnp.where(pw >= 0, -pw, 0.0) - log1pe     # log(1 - sigmoid(pw))
    log_p = jnp.maximum(log_p, -100.0)
    log_1mp = jnp.maximum(log_1mp, -100.0)
    bce = -jnp.where(wrong, log_p, log_1mp)
    if row_ok is not None:
        bce = jnp.where(row_ok, bce, 0.0)

    # ---- accumulate per-pixel partials (VPU adds only; no per-step reduce) ---
    acc_ce[...] += ce
    acc_cnt[...] += valid.astype(jnp.float32)
    acc_bce[...] += bce

    @pl.when(h == pl.num_programs(1) - 1)
    def _finalize():
        ce_ref[...] = jnp.sum(acc_ce[...], axis=(0, 1), keepdims=True)
        cnt_ref[...] = jnp.sum(acc_cnt[...], axis=(0, 1), keepdims=True)
        bce_ref[...] = jnp.sum(acc_bce[...], axis=(0, 1), keepdims=True)


def _choose_tile_h(C, H, W, itemsize):
    """TILE_H: multiple of 8 (or == H) keeping a pred block at ~2 MiB."""
    budget = 2 * 1024 * 1024
    rows = max(8, ((budget // max(1, C * W * itemsize)) // 8) * 8)
    return int(H if H <= rows else rows)


def pred_wrong_loss2(pred, pred_wrong, target, *, ignore_index=255,
                     predwrongloss_weight=0.5, smooth_epoch=4, epoch=2,
                     tile_h=None):
    """pred: [B,C,H,W] logits, pred_wrong: [B,H,W] logits, target: [B,H,W] int."""
    B, C, H, W = pred.shape
    N = B * H * W
    # TODO(synk): the F.interpolate(bilinear) path for a pred_wrong whose spatial
    # size differs from target is not implemented; inputs here share (H, W).
    target = target.astype(jnp.int32)

    if tile_h is None:
        tile_h = _choose_tile_h(C, H, W, jnp.dtype(pred.dtype).itemsize)
    n_h = pl.cdiv(H, tile_h)

    kernel = functools.partial(_pred_wrong_loss_kernel,
                               ignore_index=ignore_index,
                               true_h=H, tile_h=tile_h)

    out_spec = pl.BlockSpec((None, 1, 1), lambda b, h: (b, 0, 0))
    part_shape = jax.ShapeDtypeStruct((B, 1, 1), jnp.float32)

    bytes_accessed = (int(pred.size) * jnp.dtype(pred.dtype).itemsize
                      + int(target.size) * 4
                      + int(pred_wrong.size) * jnp.dtype(pred_wrong.dtype).itemsize
                      + 3 * B * 4)

    ce_part, cnt_part, bce_part = pl.pallas_call(
        kernel,
        grid=(B, n_h),
        in_specs=[
            pl.BlockSpec((None, C, tile_h, W), lambda b, h: (b, 0, h, 0)),
            pl.BlockSpec((None, tile_h, W), lambda b, h: (b, h, 0)),
            pl.BlockSpec((None, tile_h, W), lambda b, h: (b, h, 0)),
        ],
        out_specs=(out_spec, out_spec, out_spec),
        out_shape=(part_shape, part_shape, part_shape),
        scratch_shapes=[pltpu.VMEM((tile_h, W), jnp.float32)] * 3,
        compiler_params=pltpu.CompilerParams(
            dimension_semantics=("parallel", "arbitrary")),
        cost_estimate=pl.CostEstimate(
            flops=int(N * (8 * C + 24)),
            transcendentals=int(N * (C + 3)),
            bytes_accessed=int(bytes_accessed)),
    )(pred, target, pred_wrong)

    main_loss = jnp.sum(ce_part) / jnp.maximum(jnp.sum(cnt_part), 1.0)
    predwrong_loss = jnp.sum(bce_part) / float(N)

    w = predwrongloss_weight
    if epoch < smooth_epoch:                     # global_dict['trainer'].epoch_idx
        w *= float(epoch) / smooth_epoch
    if w == 0:
        return main_loss
    return {'main_loss': main_loss, 'predwrong_loss': predwrong_loss * w}


def _reference(pred, pred_wrong, target, ignore_index, weight, smooth_epoch, epoch):
    """Pure-JAX reference mirroring the PyTorch forward, for validation."""
    logp = jax.nn.log_softmax(pred.astype(jnp.float32), axis=1)
    valid = target != ignore_index
    tgt_safe = jnp.where(valid, target, 0)
    picked = jnp.take_along_axis(logp, tgt_safe[:, None], axis=1)[:, 0]
    ce = jnp.sum(jnp.where(valid, -picked, 0.0)) / jnp.maximum(jnp.sum(valid), 1)
    amax = jnp.argmax(pred, axis=1)
    wrong = jnp.logical_and(amax != target, valid).astype(jnp.float32)
    p = jax.nn.sigmoid(pred_wrong.astype(jnp.float32))
    bce = -(wrong * jnp.maximum(jnp.log(p), -100.0)
            + (1.0 - wrong) * jnp.maximum(jnp.log1p(-p), -100.0))
    bce = jnp.mean(bce)
    w = weight * (float(epoch) / smooth_epoch if epoch < smooth_epoch else 1.0)
    return ce, bce * w


if __name__ == "__main__":
    key = jax.random.PRNGKey(0)
    ignore_index = 255

    def run_case(B, C, H, W, tile_h, k):
        k1, k2, k3 = jax.random.split(k, 3)
        pred = jax.random.normal(k1, (B, C, H, W), jnp.float32)
        pred_wrong = jax.random.normal(k2, (B, H, W), jnp.float32)
        target = jax.random.randint(k3, (B, H, W), 0, C).astype(jnp.int32)
        target = target.at[0, 0, : W // 4].set(ignore_index)   # ignored pixels
        out = pred_wrong_loss2(pred, pred_wrong, target,
                               ignore_index=ignore_index,
                               predwrongloss_weight=0.5, smooth_epoch=4,
                               epoch=2, tile_h=tile_h)
        jax.block_until_ready(out)
        ref_main, ref_pw = _reference(pred, pred_wrong, target, ignore_index,
                                      0.5, 4, 2)
        assert abs(float(out['main_loss']) - float(ref_main)) < 1e-4, (
            (B, C, H, W, tile_h), float(out['main_loss']), float(ref_main))
        assert abs(float(out['predwrong_loss']) - float(ref_pw)) < 1e-4, (
            (B, C, H, W, tile_h), float(out['predwrong_loss']), float(ref_pw))

    k1, k2, k3 = jax.random.split(key, 3)
    run_case(2, 4, 16, 16, 8, k1)      # even H tiling, multi-step accumulation
    run_case(2, 5, 20, 16, 8, k2)      # ragged H -> masked remainder tile
    run_case(2, 4, 16, 16, None, k3)   # auto tile selection (single H tile)
    print("KERNEL_OK")
</pallas_src>

<mosaic_0001>
module attributes {stable_mosaic.version = 11 : i64} {
  func.func @_pred_wrong_loss_kernel(%arg0: i32, %arg1: i32, %arg2: memref<1x4x8x16xf32, #tpu.memory_space<vmem>>, %arg3: memref<1x8x16xi32, #tpu.memory_space<vmem>>, %arg4: memref<1x8x16xf32, #tpu.memory_space<vmem>>, %arg5: memref<1x1x1xf32, #tpu.memory_space<vmem>>, %arg6: memref<1x1x1xf32, #tpu.memory_space<vmem>>, %arg7: memref<1x1x1xf32, #tpu.memory_space<vmem>>, %arg8: memref<8x16xf32, #tpu.memory_space<vmem>>, %arg9: memref<8x16xf32, #tpu.memory_space<vmem>>, %arg10: memref<8x16xf32, #tpu.memory_space<vmem>>) attributes {dimension_semantics = [#tpu.dimension_semantics<parallel>, #tpu.dimension_semantics<arbitrary>], iteration_bounds = array<i64: 2, 2>, scalar_prefetch = 0 : i64, scratch_operands = 3 : i64, tpu.core_type = #tpu.core_type<tc>, window_params = [{transform_indices = @transform_0, window_bounds = array<i64: 1, 4, 8, 16>}, {transform_indices = @transform_1, window_bounds = array<i64: 1, 8, 16>}, {transform_indices = @transform_2, window_bounds = array<i64: 1, 8, 16>}, {transform_indices = @transform_3, window_bounds = array<i64: 1, 1, 1>}, {transform_indices = @transform_4, window_bounds = array<i64: 1, 1, 1>}, {transform_indices = @transform_5, window_bounds = array<i64: 1, 1, 1>}]} {
    %c0_i32 = arith.constant 0 : i32
    %0 = arith.cmpi eq, %arg1, %c0_i32 : i32
    %1 = arith.extui %0 : i1 to i32
    %c0_i32_0 = arith.constant 0 : i32
    %2 = arith.cmpi ne, %1, %c0_i32_0 : i32
    scf.if %2 {
      %cst_37 = arith.constant 0.000000e+00 : f32
      %75 = vector.broadcast %cst_37 : f32 to vector<8x16xf32>
      %c0_38 = arith.constant 0 : index
      %c0_39 = arith.constant 0 : index
      %76 = vector.load %arg8[%c0_38, %c0_39] : memref<8x16xf32, #tpu.memory_space<vmem>>, vector<8x16xf32>
      tpu.vector_store %arg8[%c0_38, %c0_39], %75 {strides = array<i32>} : memref<8x16xf32, #tpu.memory_space<vmem>>, vector<8x16xf32>,
      %cst_40 = arith.constant 0.000000e+00 : f32
      %77 = vector.broadcast %cst_40 : f32 to vector<8x16xf32>
      %c0_41 = arith.constant 0 : index
      %c0_42 = arith.constant 0 : index
      %78 = vector.load %arg9[%c0_41, %c0_42] : memref<8x16xf32, #tpu.memory_space<vmem>>, vector<8x16xf32>
      tpu.vector_store %arg9[%c0_41, %c0_42], %77 {strides = array<i32>} : memref<8x16xf32, #tpu.memory_space<vmem>>, vector<8x16xf32>,
      %cst_43 = arith.constant 0.000000e+00 : f32
      %79 = vector.broadcast %cst_43 : f32 to vector<8x16xf32>
      %c0_44 = arith.constant 0 : index
      %c0_45 = arith.constant 0 : index
      %80 = vector.load %arg10[%c0_44, %c0_45] : memref<8x16xf32, #tpu.memory_space<vmem>>, vector<8x16xf32>
      tpu.vector_store %arg10[%c0_44, %c0_45], %79 {strides = array<i32>} : memref<8x16xf32, #tpu.memory_space<vmem>>, vector<8x16xf32>,
    } else {
    }
    %c0 = arith.constant 0 : index
    %c0_1 = arith.constant 0 : index
    %c0_2 = arith.constant 0 : index
    %c0_3 = arith.constant 0 : index
    %3 = vector.load %arg2[%c0, %c0_1, %c0_2, %c0_3] : memref<1x4x8x16xf32, #tpu.memory_space<vmem>>, vector<1x4x8x16xf32>
    %4 = vector.shape_cast %3 : vector<1x4x8x16xf32> to vector<4x8x16xf32>
    %c0_4 = arith.constant 0 : index
    %c0_5 = arith.constant 0 : index
    %c0_6 = arith.constant 0 : index
    %5 = vector.load %arg3[%c0_4, %c0_5, %c0_6] : memref<1x8x16xi32, #tpu.memory_space<vmem>>, vector<1x8x16xi32>
    %6 = vector.shape_cast %5 : vector<1x8x16xi32> to vector<8x16xi32>
    %c0_7 = arith.constant 0 : index
    %c0_8 = arith.constant 0 : index
    %c0_9 = arith.constant 0 : index
    %7 = vector.load %arg4[%c0_7, %c0_8, %c0_9] : memref<1x8x16xf32, #tpu.memory_space<vmem>>, vector<1x8x16xf32>
    %8 = vector.shape_cast %7 : vector<1x8x16xf32> to vector<8x16xf32>
    %c255_i32 = arith.constant 255 : i32
    %9 = vector.broadcast %c255_i32 : i32 to vector<8x16xi32>
    %10 = arith.cmpi ne, %6, %9 : vector<8x16xi32>
    %cst = arith.constant dense<0xFF800000> : vector<8x16xf32>
    %11 = vector.multi_reduction <maximumf>, %4, %cst [0] : vector<4x8x16xf32> to vector<8x16xf32>
    %12 = vector.shape_cast %11 : vector<8x16xf32> to vector<1x8x16xf32>
    %13 = vector.broadcast %12 : vector<1x8x16xf32> to vector<4x8x16xf32>
    %14 = arith.subf %4, %13 : vector<4x8x16xf32>
    %15 = math.exp %14 : vector<4x8x16xf32>
    %cst_10 = arith.constant dense<0.000000e+00> : vector<8x16xf32>
    %16 = vector.multi_reduction <add>, %15, %cst_10 [0] : vector<4x8x16xf32> to vector<8x16xf32>
    %17 = math.log %16 : vector<8x16xf32>
    %18 = arith.addf %11, %17 : vector<8x16xf32>
    %19 = tpu.iota {dimensions = array<i32: 0>} : vector<4x8x16xi32>
    %20 = vector.shape_cast %6 : vector<8x16xi32> to vector<1x8x16xi32>
    %21 = vector.broadcast %20 : vector<1x8x16xi32> to vector<4x8x16xi32>
    %22 = arith.cmpi eq, %19, %21 : vector<4x8x16xi32>
    %cst_11 = arith.constant 0.000000e+00 : f32
    %23 = vector.broadcast %cst_11 : f32 to vector<4x8x16xf32>
    %24 = arith.select %22, %4, %23 : vector<4x8x16xi1>, vector<4x8x16xf32>
    %cst_12 = arith.constant dense<0.000000e+00> : vector<8x16xf32>
    %25 = vector.multi_reduction <add>, %24, %cst_12 [0] : vector<4x8x16xf32> to vector<8x16xf32>
    %26 = arith.subf %18, %25 : vector<8x16xf32>
    %cst_13 = arith.constant 0.000000e+00 : f32
    %27 = vector.broadcast %cst_13 : f32 to vector<8x16xf32>
    %28 = arith.select %10, %26, %27 : vector<8x16xi1>, vector<8x16xf32>
    %29 = vector.shape_cast %11 : vector<8x16xf32> to vector<1x8x16xf32>
    %30 = vector.broadcast %29 : vector<1x8x16xf32> to vector<4x8x16xf32>
    %31 = arith.cmpf oeq, %4, %30 : vector<4x8x16xf32>
    %c4_i32 = arith.constant 4 : i32
    %32 = vector.broadcast %c4_i32 : i32 to vector<4x8x16xi32>
    %33 = arith.select %31, %19, %32 : vector<4x8x16xi1>, vector<4x8x16xi32>
    %cst_14 = arith.constant dense<2147483647> : vector<8x16xi32>
    %34 = vector.multi_reduction <minsi>, %33, %cst_14 [0] : vector<4x8x16xi32> to vector<8x16xi32>
    %35 = arith.cmpi ne, %34, %6 : vector<8x16xi32>
    %36 = arith.andi %35, %10 : vector<8x16xi1>
    %37 = math.absf %8 : vector<8x16xf32>
    %cst_15 = arith.constant 0.000000e+00 : f32
    %38 = vector.broadcast %cst_15 : f32 to vector<8x16xf32>
    %39 = arith.subf %38, %37 : vector<8x16xf32>
    %40 = math.exp %39 : vector<8x16xf32>
    %41 = math.log1p %40 : vector<8x16xf32>
    %cst_16 = arith.constant 0.000000e+00 : f32
    %42 = vector.broadcast %cst_16 : f32 to vector<8x16xf32>
    %43 = arith.cmpf oge, %8, %42 : vector<8x16xf32>
    %cst_17 = arith.constant 0.000000e+00 : f32
    %44 = vector.broadcast %cst_17 : f32 to vector<8x16xf32>
    %45 = arith.select %43, %44, %8 : vector<8x16xi1>, vector<8x16xf32>
    %46 = arith.subf %45, %41 : vector<8x16xf32>
    %cst_18 = arith.constant 0.000000e+00 : f32
    %47 = vector.broadcast %cst_18 : f32 to vector<8x16xf32>
    %48 = arith.cmpf oge, %8, %47 : vector<8x16xf32>
    %cst_19 = arith.constant 0.000000e+00 : f32
    %49 = vector.broadcast %cst_19 : f32 to vector<8x16xf32>
    %50 = arith.subf %49, %8 : vector<8x16xf32>
    %cst_20 = arith.constant 0.000000e+00 : f32
    %51 = vector.broadcast %cst_20 : f32 to vector<8x16xf32>
    %52 = arith.select %48, %50, %51 : vector<8x16xi1>, vector<8x16xf32>
    %53 = arith.subf %52, %41 : vector<8x16xf32>
    %cst_21 = arith.constant -1.000000e+02 : f32
    %54 = vector.broadcast %cst_21 : f32 to vector<8x16xf32>
    %55 = arith.maximumf %46, %54 : vector<8x16xf32>
    %cst_22 = arith.constant -1.000000e+02 : f32
    %56 = vector.broadcast %cst_22 : f32 to vector<8x16xf32>
    %57 = arith.maximumf %53, %56 : vector<8x16xf32>
    %58 = arith.select %36, %55, %57 : vector<8x16xi1>, vector<8x16xf32>
    %cst_23 = arith.constant 0.000000e+00 : f32
    %59 = vector.broadcast %cst_23 : f32 to vector<8x16xf32>
    %60 = arith.subf %59, %58 : vector<8x16xf32>
    %c0_24 = arith.constant 0 : index
    %c0_25 = arith.constant 0 : index
    %61 = vector.load %arg8[%c0_24, %c0_25] : memref<8x16xf32, #tpu.memory_space<vmem>>, vector<8x16xf32>
    %62 = arith.addf %61, %28 : vector<8x16xf32>
    %c0_26 = arith.constant 0 : index
    %c0_27 = arith.constant 0 : index
    %63 = vector.load %arg8[%c0_26, %c0_27] : memref<8x16xf32, #tpu.memory_space<vmem>>, vector<8x16xf32>
    tpu.vector_store %arg8[%c0_26, %c0_27], %62 {strides = array<i32>} : memref<8x16xf32, #tpu.memory_space<vmem>>, vector<8x16xf32>,
    %c0_28 = arith.constant 0 : index
    %c0_29 = arith.constant 0 : index
    %64 = vector.load %arg9[%c0_28, %c0_29] : memref<8x16xf32, #tpu.memory_space<vmem>>, vector<8x16xf32>
    %65 = arith.extui %10 : vector<8x16xi1> to vector<8x16xi32>
    %66 = arith.sitofp %65 : vector<8x16xi32> to vector<8x16xf32>
    %67 = arith.addf %64, %66 : vector<8x16xf32>
    %c0_30 = arith.constant 0 : index
    %c0_31 = arith.constant 0 : index
    %68 = vector.load %arg9[%c0_30, %c0_31] : memref<8x16xf32, #tpu.memory_space<vmem>>, vector<8x16xf32>
    tpu.vector_store %arg9[%c0_30, %c0_31], %67 {strides = array<i32>} : memref<8x16xf32, #tpu.memory_space<vmem>>, vector<8x16xf32>,
    %c0_32 = arith.constant 0 : index
    %c0_33 = arith.constant 0 : index
    %69 = vector.load %arg10[%c0_32, %c0_33] : memref<8x16xf32, #tpu.memory_space<vmem>>, vector<8x16xf32>
    %70 = arith.addf %69, %60 : vector<8x16xf32>
    %c0_34 = arith.constant 0 : index
    %c0_35 = arith.constant 0 : index
    %71 = vector.load %arg10[%c0_34, %c0_35] : memref<8x16xf32, #tpu.memory_space<vmem>>, vector<8x16xf32>
    tpu.vector_store %arg10[%c0_34, %c0_35], %70 {strides = array<i32>} : memref<8x16xf32, #tpu.memory_space<vmem>>, vector<8x16xf32>,
    %c1_i32 = arith.constant 1 : i32
    %72 = arith.cmpi eq, %arg1, %c1_i32 : i32
    %73 = arith.extui %72 : i1 to i32
    %c0_i32_36 = arith.constant 0 : i32
    %74 = arith.cmpi ne, %73, %c0_i32_36 : i32
    scf.if %74 {
      %c0_37 = arith.constant 0 : index
      %c0_38 = arith.constant 0 : index
      %75 = vector.load %arg8[%c0_37, %c0_38] : memref<8x16xf32, #tpu.memory_space<vmem>>, vector<8x16xf32>
      %76 = vector.shape_cast %75 : vector<8x16xf32> to vector<1x8x16xf32>
      %cst_39 = arith.constant dense<0.000000e+00> : vector<1xf32>
      %77 = vector.multi_reduction <add>, %76, %cst_39 [1, 2] : vector<1x8x16xf32> to vector<1xf32>
      %78 = vector.shape_cast %77 : vector<1xf32> to vector<1x1x1xf32>
      %79 = vector.extract %78[0, 0, 0] : f32 from vector<1x1x1xf32>
      %80 = vector.broadcast %79 : f32 to vector<1x1xf32>
      %c0_40 = arith.constant 0 : index
      %c0_41 = arith.constant 0 : index
      %c0_42 = arith.constant 0 : index
      %81 = vector.load %arg5[%c0_40, %c0_41, %c0_42] : memref<1x1x1xf32, #tpu.memory_space<vmem>>, vector<1x1x1xf32>
      %82 = vector.shape_cast %81 : vector<1x1x1xf32> to vector<1x1xf32>
      %83 = vector.shape_cast %80 : vector<1x1xf32> to vector<1x1x1xf32>
      tpu.vector_store %arg5[%c0_40, %c0_41, %c0_42], %83 {strides = array<i32>} : memref<1x1x1xf32, #tpu.memory_space<vmem>>, vector<1x1x1xf32>,
      %c0_43 = arith.constant 0 : index
      %c0_44 = arith.constant 0 : index
      %84 = vector.load %arg9[%c0_43, %c0_44] : memref<8x16xf32, #tpu.memory_space<vmem>>, vector<8x16xf32>
      %85 = vector.shape_cast %84 : vector<8x16xf32> to vector<1x8x16xf32>
      %cst_45 = arith.constant dense<0.000000e+00> : vector<1xf32>
      %86 = vector.multi_reduction <add>, %85, %cst_45 [1, 2] : vector<1x8x16xf32> to vector<1xf32>
      %87 = vector.shape_cast %86 : vector<1xf32> to vector<1x1x1xf32>
      %88 = vector.extract %87[0, 0, 0] : f32 from vector<1x1x1xf32>
      %89 = vector.broadcast %88 : f32 to vector<1x1xf32>
      %c0_46 = arith.constant 0 : index
      %c0_47 = arith.constant 0 : index
      %c0_48 = arith.constant 0 : index
      %90 = vector.load %arg6[%c0_46, %c0_47, %c0_48] : memref<1x1x1xf32, #tpu.memory_space<vmem>>, vector<1x1x1xf32>
      %91 = vector.shape_cast %90 : vector<1x1x1xf32> to vector<1x1xf32>
      %92 = vector.shape_cast %89 : vector<1x1xf32> to vector<1x1x1xf32>
      tpu.vector_store %arg6[%c0_46, %c0_47, %c0_48], %92 {strides = array<i32>} : memref<1x1x1xf32, #tpu.memory_space<vmem>>, vector<1x1x1xf32>,
      %c0_49 = arith.constant 0 : index
      %c0_50 = arith.constant 0 : index
      %93 = vector.load %arg10[%c0_49, %c0_50] : memref<8x16xf32, #tpu.memory_space<vmem>>, vector<8x16xf32>
      %94 = vector.shape_cast %93 : vector<8x16xf32> to vector<1x8x16xf32>
      %cst_51 = arith.constant dense<0.000000e+00> : vector<1xf32>
      %95 = vector.multi_reduction <add>, %94, %cst_51 [1, 2] : vector<1x8x16xf32> to vector<1xf32>
      %96 = vector.shape_cast %95 : vector<1xf32> to vector<1x1x1xf32>
      %97 = vector.extract %96[0, 0, 0] : f32 from vector<1x1x1xf32>
      %98 = vector.broadcast %97 : f32 to vector<1x1xf32>
      %c0_52 = arith.constant 0 : index
      %c0_53 = arith.constant 0 : index
      %c0_54 = arith.constant 0 : index
      %99 = vector.load %arg7[%c0_52, %c0_53, %c0_54] : memref<1x1x1xf32, #tpu.memory_space<vmem>>, vector<1x1x1xf32>
      %100 = vector.shape_cast %99 : vector<1x1x1xf32> to vector<1x1xf32>
      %101 = vector.shape_cast %98 : vector<1x1xf32> to vector<1x1x1xf32>
      tpu.vector_store %arg7[%c0_52, %c0_53, %c0_54], %101 {strides = array<i32>} : memref<1x1x1xf32, #tpu.memory_space<vmem>>, vector<1x1x1xf32>,
    } else {
    }
    return
  }
  func.func @transform_0(%arg0: i32, %arg1: i32) -> (i32, i32, i32, i32) {
    %c0_i32 = arith.constant 0 : i32
    %c0_i32_0 = arith.constant 0 : i32
    %c0_i32_1 = arith.constant 0 : i32
    return %arg0, %c0_i32, %arg1, %c0_i32_0 : i32, i32, i32, i32
  }
  func.func @transform_1(%arg0: i32, %arg1: i32) -> (i32, i32, i32) {
    %c0_i32 = arith.constant 0 : i32
    %c0_i32_0 = arith.constant 0 : i32
    return %arg0, %arg1, %c0_i32 : i32, i32, i32
  }
  func.func @transform_2(%arg0: i32, %arg1: i32) -> (i32, i32, i32) {
    %c0_i32 = arith.constant 0 : i32
    %c0_i32_0 = arith.constant 0 : i32
    return %arg0, %arg1, %c0_i32 : i32, i32, i32
  }
  func.func @transform_3(%arg0: i32, %arg1: i32) -> (i32, i32, i32) {
    %c0_i32 = arith.constant 0 : i32
    %c0_i32_0 = arith.constant 0 : i32
    %c0_i32_1 = arith.constant 0 : i32
    return %arg0, %c0_i32, %c0_i32_0 : i32, i32, i32
  }
  func.func @transform_4(%arg0: i32, %arg1: i32) -> (i32, i32, i32) {
    %c0_i32 = arith.constant 0 : i32
    %c0_i32_0 = arith.constant 0 : i32
    %c0_i32_1 = arith.constant 0 : i32
    return %arg0, %c0_i32, %c0_i32_0 : i32, i32, i32
  }
  func.func @transform_5(%arg0: i32, %arg1: i32) -> (i32, i32, i32) {
    %c0_i32 = arith.constant 0 : i32
    %c0_i32_0 = arith.constant 0 : i32
    %c0_i32_1 = arith.constant 0 : i32
    return %arg0, %c0_i32, %c0_i32_0 : i32, i32, i32
  }
}

</mosaic_0001>

<bundles_post_ra>
// kernel: tpu_custom_call.1
= control target key start
LH: loop header
LB: loop body
LE: loop exit
PB: predicated region body
PF: predicated region fallthrough
CT: control target
= control target key end

     0   :  { %s1269_s0 = inlined_call_operand.hbm [shape: f32[2,4,16,16], index: 0, kind: input, shape index: {}]   ;;  %s1270_s1 = inlined_call_operand.hbm [shape: s32[2,16,16], index: 1, kind: input, shape index: {}]   ;;  %s1271_s2 = inlined_call_operand.hbm [shape: f32[2,16,16], index: 2, kind: input, shape index: {}]   ;;  %s1272_s3 = inlined_call_operand.vmem [shape: f32[2,1,1], index: 3, kind: output, shape index: {0}]   ;;  %s1273_s4 = inlined_call_operand.vmem [shape: f32[2,1,1], index: 4, kind: output, shape index: {1}]   ;;  %s1274_s5 = inlined_call_operand.vmem [shape: f32[2,1,1], index: 5, kind: output, shape index: {2}]  }
   0x1   :  { %1279 = sst [smem:[#allocation14_spill]] %s1269_s0 }
   0x2   :  { %1280 = sst [smem:[#allocation15_spill]] %s1270_s1 }
   0x3   :  { %11 = vsyncpa [#allocation6], 0 }
   0x4   :  { %13 = vsyncpa [#allocation6 + $0x1], 0 }
   0x5   :  { %14 = vsyncpa [#allocation8], 0 }
   0x6   :  { %16 = vsyncpa [#allocation8 + $0x1], 0  ;;  %s1005_s18 = smov 0   ;;  %s1007_s19 = smov 0  }
   0x7   :  { %s1009_s20 = smov 0   ;;  %s1011_s21 = smov 0  }
   0x8   :  { %s1013_s22 = smov 0   ;;  %s1015_s23 = smov 0  }
   0x9   :  { %s1017_s24 = smov 0   ;;  %s1019_s25 = smov 0  }
   0xa LB: > { %s1275_s26 = sadd.s32 4294967295, %s964_s25   ;;  %s31_s27 = sadd.s32 1, %s956_s23  ;;  %s964_s25 = sphi %s1019_s25, %s22_s25   ;;  %s960_s24 = sphi %s1017_s24, %s1298_s24   ;;  %s956_s23 = sphi %s1015_s23, %s1297_s23   ;;  %s952_s22 = sphi %s1013_s22, %s1296_s22   ;;  %s948_s21 = sphi %s1011_s21, %s1295_s21   ;;  %s944_s20 = sphi %s1009_s20, %s1294_s20   ;;  %s940_s19 = sphi %s1007_s19, %s1293_s19   ;;  %s936_s18 = sphi %s1005_s18, %s1292_s18  }
   0xb   : > { %p32_p0 = scmp.ge.s32.totalorder %s31_s27, 2  ;;  %s34_s28 = sadd.s32 1, %s960_s24 }
   0xc   : > { %s43_s29 = sadd.s32 1, %s944_s20  ;;  %p50_p1 = scmp.ne.s32.totalorder %s944_s20, %s940_s19 }
   0xd   : > { %s1300_s27 = smov (%p32_p0, %s31_s27), 0  ;;  %s1302_s28 = smov (!%p32_p0, %s34_s28), %s960_s24 }
   0xe   : > { %1281 = sst [smem:[#allocation12_spill]] %s1300_s27  ;;  %s39_s30 = ssub.s32 %s956_s23, %s1300_s27 }
   0xf   : > { %p51_p2 = scmp.eq.s32.totalorder %s964_s25, 0  ;;  %p36_p3 = scmp.ge.s32.totalorder %s1302_s28, 2 }
  0x10   : > { %p56_p4 = scmp.ne.s32.totalorder %s940_s19, %s936_s18  ;;  %p57_p6 = scmp.eq.s32.totalorder %s1275_s26, 0 }
  0x11   : > { %p52_p5 = por %p51_p2, %p50_p1  ;;  %s1304_s28 = smov (%p36_p3, %s1302_s28), 0 }
  0x12   : > { %1282 = sst [smem:[#allocation13_spill]] %s1304_s28  ;;  %p1060_p7 = por %p57_p6, %p56_p4 }
  0x13   : > { %s38_s7 = ssub.s32 %s960_s24, %s1304_s28  ;;  %p725_p8 = scmp.lt.s32.totalorder %s964_s25, 4 }
  0x14   : > { %s40_s8 = sor.u32 %s39_s30, %s38_s7  ;;  %s1068_s9 = sand.u32 1, %s944_s20  }
  0x15   : > { %p41_p9 = scmp.eq.s32.totalorder %s40_s8, 0  ;;  %s685_s10 = sshll.u32 %s1068_s9, 5 }
  0x16   : > { %p1071_p10 = pnand %p725_p8, %p52_p5  ;;  %s218_s13 = scalar_lea.vmem [#allocation5], %s685_s10 }
  0x17   : > { %s1076_s12 = scalar_select %p41_p9, %s944_s20, %s43_s29  }
  0x18   : > { %s226_s14 = sshll.u32 %s218_s13, 4  ;;  %s236_s15 = sand.u32 1, %s964_s25   ;;  %s1079_s14 = int_to_ptr.vmem [resolvable:$true] %s226_s14 }
  0x19   : > { %s1278_s16 = sshll.u32 %s1068_s9, 3  ;;  %s689_s17 = sshll.u32 %s960_s24, 1 }
  0x1a   : > { %s245_s18 = sadd.s32 %s956_s23, %s689_s17  ;;  %s240_s7 = scalar_lea.vmem [#allocation7], %s1278_s16 }
  0x1b   : > { %s690_s30 = sshll.u32 %s245_s18, 7  ;;  %s249_s8 = sshll.u32 %s240_s7, 4  ;;  %s250_s8 = int_to_ptr.vmem [resolvable:$true] %s249_s8 }
  0x1c   : > { %s1285_s1 = sld [smem:[#allocation15_spill]]  ;;  %s1089_s29 = scalar_lea.sflag [#allocation8], %s236_s15 }
  0x1d   : > { %p812_p11 = pneg %p1071_p10  ;;  %s823_s10 = scalar_lea.vmem %s250_s8, 128 }
  0x1e   : > { %p824_p12 = scmp.ne.s32.totalorder %s250_s8, %s823_s10  ;;  %s966_s13 = smov [#allocation7]  }
  0x1f   : > { %s828_s17 = sshll.u32 %s966_s13, 4  ;;  %s829_s17 = int_to_ptr.vmem [resolvable:$false] %s828_s17 }
  0x20   : > { %p826_p13 = pnand %p824_p12, %p812_p11  ;;  %s830_s18 = scalar_lea.vmem %s829_s17, 256 }
  0x21   : > { %p831_p1 = scmp.lt.s32.totalorder %s250_s8, %s829_s17  ;;  %p832_p2 = scmp.lt.s32.totalorder %s830_s18, %s823_s10 }
  0x22   : > { %s247_s27 = scalar_lea.hbm %s1285_s1, %s690_s30  ;;  %p827_p0 = pneg %p826_p13 }
  0x23   : > { %p833_p3 = por %p832_p2, %p831_p1 }
  0x25   : > { %p834_p4 = pnand %p833_p3, %p827_p0 }
  0x27   : > { %837 = shalt.err (!%p834_p4)
}
  0x28   : > { %721 = dma.hbm_to_vmem [thread:$0]  (!%p1071_p10), %s247_s27, 128, %s250_s8, %s1089_s29  }
  0x29   : > { %s1102_s15 = scalar_lea.hbm %s1271_s2, %s690_s30  ;;  %p694_p5 = scmp.ge.s32.totalorder %s964_s25, 1 }
  0x2a   : > { %p274_p6 = scmp.lt.s32.totalorder %s964_s25, 5  ;;  %s686_s10 = sshll.u32 %s960_s24, 3 }
  0x2b   : > { %s223_s13 = sadd.s32 %s956_s23, %s686_s10  ;;  %s1287_s0 = sld [smem:[#allocation14_spill]] }
  0x2c   : > { %p1106_p8 = pnand %p694_p5, %p274_p6  ;;  %s687_s17 = sshll.u32 %s223_s13, 7 }
  0x2d   : > { %s215_s27 = scalar_lea.sflag [#allocation6], %s1068_s9  ;;  %s851_s8 = scalar_lea.vmem %s1079_s14, 512 }
  0x2e   : > { %p852_p9 = scmp.ne.s32.totalorder %s1079_s14, %s851_s8  ;;  %s967_s30 = smov [#allocation5]  }
  0x2f   : > { %s856_s26 = sshll.u32 %s967_s30, 4  ;;  %s857_s26 = int_to_ptr.vmem [resolvable:$false] %s856_s26 }
  0x30   : > { %p854_p12 = pnand %p852_p9, %p812_p11  ;;  %s858_s28 = scalar_lea.vmem %s857_s26, 1024 }
  0x31   : > { %s225_s1 = scalar_lea.hbm %s1287_s0, %s687_s17  ;;  %p859_p0 = scmp.lt.s32.totalorder %s1079_s14, %s857_s26 }
  0x32   : > { %p855_p13 = pneg %p854_p12  ;;  %p860_p1 = scmp.lt.s32.totalorder %s858_s28, %s851_s8 }
  0x34   : > { %p861_p2 = por %p860_p1, %p859_p0 }
  0x36   : > { %p862_p3 = pnand %p861_p2, %p855_p13 }
  0x38   : > { %865 = shalt.err (!%p862_p3)
}
  0x39   : > { %s968_s10 = smov 256   ;;  %s969_s16 = smov 128  }
  0x3a   : > { %s970_s13 = smov 8   ;;  %s1288_s17 = sshll.u32 %s1068_s9, 3 }
  0x3b   : > { %718 = dma.hbm_to_vmem [thread:$0]  (!%p1071_p10), %s225_s1, 512, %s1079_s14, %s215_s27, %s968_s10, %s969_s16, %s970_s13  }
  0x3c   : > { %s260_s18 = scalar_lea.vmem [#allocation9], %s1288_s17  ;;  %s971_s8 = smov [#allocation9]  }
  0x3d   : > { %s269_s0 = sshll.u32 %s260_s18, 4  ;;  %s884_s26 = sshll.u32 %s971_s8, 4  ;;  %s270_s0 = int_to_ptr.vmem [resolvable:$true] %s269_s0  ;;  %s885_s26 = int_to_ptr.vmem [resolvable:$false] %s884_s26 }
  0x3e   : > { %s879_s30 = scalar_lea.vmem %s270_s0, 128  ;;  %s886_s28 = scalar_lea.vmem %s885_s26, 256 }
  0x3f   : > { %p880_p4 = scmp.ne.s32.totalorder %s270_s0, %s879_s30  ;;  %p887_p9 = scmp.lt.s32.totalorder %s270_s0, %s885_s26 }
  0x40   : > { %p888_p12 = scmp.lt.s32.totalorder %s886_s28, %s879_s30 }
  0x41   : > { %p882_p5 = pnand %p880_p4, %p812_p11 }
  0x42   : > { %p889_p13 = por %p888_p12, %p887_p9 }
  0x43   : > { %p883_p6 = pneg %p882_p5 }
  0x45   : > { %p890_p0 = pnand %p889_p13, %p883_p6 }
  0x47   : > { %893 = shalt.err (!%p890_p0)
}
  0x48   : > { %724 = dma.hbm_to_vmem [thread:$0]  (!%p1071_p10), %s1102_s15, 128, %s270_s0, %s1089_s29  }
  0x49   : > { %278 = sbr.rel (%p1106_p8) target bundleno = 367 (0x16f), region = 32  ;;  %s280_s1 = sand.u32 (!%p1106_p8), 1, %s940_s19  }
  0x4a   : > { %s695_s9 = sshll.u32 (!%p1106_p8), %s280_s1, 5  ;;  %s281_s14 = scalar_lea.sflag (!%p1106_p8), [#allocation6], %s280_s1 }
  0x4b   : > { %s284_s27 = scalar_lea.vmem (!%p1106_p8), [#allocation5], %s695_s9 }
  0x4e   : > { %927 = dma.done.wait (%p1060_p7), %s281_s14, 512  }
  0x4f   : > { %929 = vsyncadd (%p1060_p7), %s281_s14, 4294966784  ;;  %s1289_s10 = sadd.s32 4294967295, %s964_s25   ;;  %s696_s16 = sshll.u32 %s280_s1, 3 }
  0x50   : > { %s289_s11 = sand.u32 1, %s1289_s10   ;;  %s293_s29 = scalar_lea.vmem [#allocation7], %s696_s16 }
  0x51   : > { %s290_s0 = scalar_lea.sflag [#allocation8], %s289_s11 }
  0x52   : > { %931 = dma.done.wait (%p1060_p7), %s290_s0, 256  }
  0x53   : > { %933 = vsyncadd (%p1060_p7), %s290_s0, 4294967040  ;;  %p343_p10 = scmp.lt.s32.totalorder %s952_s22, 1  ;;  %s302_s28 = scalar_lea.vmem [#allocation9], %s696_s16 }
  0x54   : > { %p698_p7 = scmp.ne.s32.totalorder %s948_s21, 0 }
  0x55   : > { %s1306_s22 = smov (!%p343_p10, %s952_s22), 1 }
  0x56   : > { %s345_s13 = scalar_lea.vmem %s1272_s3, %s1306_s22  ;;  %s348_s30 = scalar_lea.vmem %s1273_s4, %s1306_s22 }
  0x57   : > { %s351_s6 = scalar_lea.vmem %s1274_s5, %s1306_s22  ;;  %355 = sbr.rel (%p698_p7) target bundleno = 95 (0x5f), region = 48 }
  0x5c   : > { %vm356_vm0 = vcmask 130048   ;;  %v972_v0 = vmov 0.0  }
  0x5d   : > { %357 = vst.msk [vmem:[#allocation2] sm:$0xff] %vm356_vm0, %v972_v0  ;;  %358 = vst.msk [vmem:[#allocation3] sm:$0xff] %vm356_vm0, %v972_v0 }
  0x5e   : > { %359 = vst.msk [vmem:[#allocation4] sm:$0xff] %vm356_vm0, %v972_v0 }
  0x5f PF: > { %v360_v1 = vld [vmem:[%s284_s27] sm:$0xff]  ;;  %v361_v2 = vld [vmem:[%s284_s27 + $0x8] sm:$0xff]  ;;  %v1164_v3 = vld [vmem:[%s284_s27 + $0x10] sm:$0xff]  ;;  %vm367_vm1 = vcmask 130048   ;;  %v973_v15 = vmov 0.0   ;;  %v974_v40 = vmov 4  }
  0x60   : > { %v1166_v4 = vld [vmem:[%s284_s27 + $0x18] sm:$0xff]  ;;  %v368_v5 = vsel %vm367_vm1, %v360_v1, -inf  ;;  %v369_v6 = vsel %vm367_vm1, %v361_v2, -inf  ;;  %v370_v7 = vsel %vm367_vm1, %v1164_v3, -inf  ;;  %v1174_v11 = vld [vmem:[%s293_s29] sm:$0xff]  ;;  %p700_p11 = scmp.ne.s32.totalorder %s948_s21, 1 }
  0x61   : > { %v371_v8 = vsel %vm367_vm1, %v1166_v4, -inf  ;;  %v372_v9 = vmax.f32 %v368_v5, %v369_v6  ;;  %vm366_vm2 = vcmp.ne.s32.totalorder %v1174_v11, 255  ;;  %v1179_v14 = vld [vmem:[%s302_s28] sm:$0xff]  ;;  %vm397_vm7 = vcmp.eq.s32.totalorder %v1174_v11, 0 }
  0x62   : > { %v373_v10 = vmax.f32 %v370_v7, %v371_v8  ;;  %v699_v16 = vsel %vm366_vm2, 1.0, %v973_v15  ;;  %v434_v22 = vand.u32 2147483647, %v1179_v14  ;;  %vm398_vm8 = vcmp.eq.s32.totalorder %v1174_v11, 1 }
  0x63   : > { %vm399_vm9 = vcmp.eq.s32.totalorder %v1174_v11, 2  ;;  %v401_v47 = vsel %vm397_vm7, %v360_v1, 0.0  ;;  %v402_v48 = vsel %vm398_vm8, %v361_v2, 0.0  ;;  %vm400_vm12 = vcmp.eq.s32.totalorder %v1174_v11, 3 }
  0x64   : > { %v1177_v12 = vmax.f32 %v372_v9, %v373_v10  ;;  %v460_v13 = vld [vmem:[#allocation3] sm:$0xff]  ;;  %v435_v27 = vsub.f32 0.0, %v434_v22  ;;  %v405_v53 = vsel %vm367_vm1, %v401_v47, 0.0  ;;  %v406_v54 = vsel %vm367_vm1, %v402_v48, 0.0 }
  0x65   : > { %v463_v21 = vadd.f32 %v699_v16, %v460_v13  ;;  %v403_v55 = vsel %vm399_vm9, %v1164_v3, 0.0  ;;  %v407_v57 = vadd.f32 %v406_v54, %v405_v53  ;;  %v404_v61 = vsel %vm400_vm12, %v1166_v4, 0.0 }
  0x66   : > { %v375_v17 = vsub.f32 %v360_v1, %v1177_v12  ;;  %v376_v18 = vsub.f32 %v361_v2, %v1177_v12  ;;  %v377_v19 = vsub.f32 %v1164_v3, %v1177_v12  ;;  %v378_v20 = vsub.f32 %v1166_v4, %v1177_v12 }
  0x67   : > { %464 = vst.msk [vmem:[#allocation3] sm:$0xff] %vm367_vm1, %v463_v21  ;;  %v436_v28 = vmul.f32 1.442695, %v435_v27  ;;  %vm414_vm3 = vcmp.eq.f32.partialorder %v360_v1, %v1177_v12  ;;  %vm415_vm4 = vcmp.eq.f32.partialorder %v361_v2, %v1177_v12  ;;  %vm416_vm5 = vcmp.eq.f32.partialorder %v1164_v3, %v1177_v12 }
  0x68   : > { %v379_v23 = vmul.f32 1.442695, %v375_v17  ;;  %v381_v24 = vmul.f32 1.442695, %v376_v18  ;;  %v383_v25 = vmul.f32 1.442695, %v377_v19  ;;  %vm417_vm6 = vcmp.eq.f32.partialorder %v1166_v4, %v1177_v12 }
  0x69   : > { %v385_v26 = vmul.f32 1.442695, %v378_v20  ;;  %v418_v41 = vsel %vm414_vm3, 0, %v974_v40  ;;  %v419_v42 = vsel %vm415_vm4, 1, %v974_v40  ;;  %v420_v44 = vsel %vm416_vm5, 2, %v974_v40  ;;  %v457_v18 = vld [vmem:[#allocation2] sm:$0xff] }
  0x6a   : > { %796 = vpow2.f32 %v379_v23  ;;  %v421_v45 = vsel %vm417_vm6, 3, %v974_v40  ;;  %v422_v49 = vsel %vm367_vm1, %v418_v41, 2147483647  ;;  %v423_v50 = vsel %vm367_vm1, %v419_v42, 2147483647 }
  0x6b   : > { %798 = vpow2.f32 %v381_v24  ;;  %v424_v51 = vsel %vm367_vm1, %v420_v44, 2147483647  ;;  %v425_v52 = vsel %vm367_vm1, %v421_v45, 2147483647  ;;  %vm426_vm10 = vcmp.lt.s32.totalorder %v422_v49, %v423_v50 }
  0x6c   : > { %800 = vpow2.f32 %v383_v25  ;;  %vm428_vm11 = vcmp.lt.s32.totalorder %v424_v51, %v425_v52  ;;  %v408_v58 = vsel %vm367_vm1, %v403_v55, 0.0  ;;  %v427_v59 = vsel %vm426_vm10, %v422_v49, %v423_v50  ;;  %v465_v25 = vld [vmem:[#allocation4] sm:$0xff] }
  0x6d   : > { %802 = vpow2.f32 %v385_v26  ;;  %v429_v60 = vsel %vm428_vm11, %v424_v51, %v425_v52  ;;  %v409_v63 = vadd.f32 %v408_v58, %v407_v57  ;;  %v410_v1 = vsel %vm367_vm1, %v404_v61, 0.0 }
  0x6e   : > { %804 = vpow2.f32 %v436_v28  ;;  %vm430_vm13 = vcmp.lt.s32.totalorder %v427_v59, %v429_v60  ;;  %v450_v2 = vsub.f32 0.0, %v1179_v14  ;;  %vm447_vm14 = vcmp.ge.f32.partialorder %v1179_v14, 0.0 }
  0x6f   : > { %v431_v5 = vsel %vm430_vm13, %v427_v59, %v429_v60  ;;  %v411_v9 = vadd.f32 %v410_v1, %v409_v63  ;;  %v448_v4 = vsel %vm447_vm14, 0.0, %v1179_v14 }
  0x70   : > { %v451_v13 = vsel %vm447_vm14, %v450_v2, 0.0  ;;  %vm432_vm0 = vcmp.ne.s32.totalorder %v431_v5, %v1174_v11 }
  0x71   : > { %vm433_vm3 = vmand %vm432_vm0, %vm366_vm2 }
  0x77   : > { %v797_v29 = vpop.eup %796 }
  0x78   : > { %v799_v30 = vpop.eup %798  ;;  %v387_v31 = vsel %vm367_vm1, %v797_v29, 0.0 }
  0x79   : > { %v801_v32 = vpop.eup %800  ;;  %v388_v33 = vsel %vm367_vm1, %v799_v30, 0.0 }
  0x7a   : > { %v803_v34 = vpop.eup %802  ;;  %v389_v35 = vadd.f32 %v388_v33, %v387_v31  ;;  %v390_v36 = vsel %vm367_vm1, %v801_v32, 0.0 }
  0x7b   : > { %v392_v37 = vsel %vm367_vm1, %v803_v34, 0.0  ;;  %v805_v39 = vpop.eup %804 }
  0x7c   : > { %v391_v38 = vadd.f32 %v390_v36, %v389_v35  ;;  %v438_v46 = vadd.f32 1.0, %v805_v39  ;;  %v441_v56 = vmul.f32 -0.5, %v805_v39  ;;  %v444_v0 = vand.u32 2147483647, %v805_v39 }
  0x7e   : > { %v393_v43 = vadd.f32 %v392_v37, %v391_v38  ;;  %v442_v62 = vadd.f32 1.0, %v441_v56  ;;  %vm445_vm15 = vcmp.lt.f32.partialorder %v444_v0, 0.0004427343 }
  0x80   : > { %806 = vlog2.f32 %v393_v43  ;;  %v443_v6 = vmul.f32 %v805_v39, %v442_v62 }
  0x81   : > { %808 = vlog2.f32 %v438_v46 }
  0x8d   : > { %v807_v3 = vpop.eup %806 }
  0x8e   : > { %v809_v7 = vpop.eup %808  ;;  %v395_v8 = vmul.f32 0.6931472, %v807_v3 }
  0x8f   : > { %v440_v10 = vmul.f32 0.6931472, %v809_v7 }
  0x90   : > { %v396_v15 = vadd.f32 %v395_v8, %v1177_v12 }
  0x91   : > { %v446_v16 = vsel %vm445_vm15, %v443_v6, %v440_v10 }
  0x92   : > { %v412_v17 = vsub.f32 %v396_v15, %v411_v9  ;;  %v449_v19 = vsub.f32 %v448_v4, %v446_v16  ;;  %v452_v20 = vsub.f32 %v451_v13, %v446_v16 }
  0x94   : > { %v413_v21 = vsel %vm366_vm2, %v412_v17, 0.0  ;;  %v453_v22 = vmax.f32 %v449_v19, -100.0  ;;  %v454_v23 = vmax.f32 %v452_v20, -100.0 }
  0x95   : > { %v458_v24 = vadd.f32 %v457_v18, %v413_v21 }
  0x96   : > { %v455_v14 = vsel %vm433_vm3, %v453_v22, %v454_v23 }
  0x97   : > { %459 = vst.msk [vmem:[#allocation2] sm:$0xff] %vm367_vm1, %v458_v24  ;;  %v456_v12 = vsub.f32 0.0, %v455_v14  ;;  %471 = sbr.rel (%p700_p11) target bundleno = 367 (0x16f), region = 52 }
  0x99   : > { %v466_v26 = vadd.f32 %v465_v25, %v456_v12 }
  0x9b   : > { %467 = vst.msk [vmem:[#allocation4] sm:$0xff] %vm367_vm1, %v466_v26 }
  0x9c   : > { %v486_v29 = vld [vmem:[#allocation3] sm:$0xff] }
  0x9d   : > { %v487_v31 = vsel %vm367_vm1, %v486_v29, 0.0 }
  0x9e   : > { %v472_v28 = vld [vmem:[#allocation2] sm:$0xff] }
  0x9f   : > { %v473_v30 = vsel %vm367_vm1, %v472_v28, 0.0 }
  0xa0   : > { %474 = vadd.xlane.f32.xlu0 %v473_v30 }
  0xa2   : > { %v499_v27 = vld [vmem:[#allocation4] sm:$0xff] }
  0xa3   : > { %v500_v11 = vsel %vm367_vm1, %v499_v27, 0.0  ;;  %vm484_vm1 = vcmask 0  }
  0xa4   : > { %501 = vadd.xlane.f32.xlu1 %v500_v11  ;;  %488 = vadd.xlane.f32.xlu0 %v487_v31 }
 0x129   : > { %v475_v33 = vpop.xlane.xlu0 %474 }
 0x12a   : > { %v476_v35 = vrot.slane %v475_v33, 4 }
 0x12c   : > { %v477_v37 = vadd.f32 %v476_v35, %v475_v33 }
 0x12d   : > { %v502_v32 = vpop.xlane.xlu1 %501  ;;  %v489_v38 = vpop.xlane.xlu0 %488 }
 0x12e   : > { %v503_v34 = vrot.slane %v502_v32, 4  ;;  %v478_v40 = vrot.slane %v477_v37, 2  ;;  %v490_v41 = vrot.slane %v489_v38, 4 }
 0x130   : > { %v504_v36 = vadd.f32 %v503_v34, %v502_v32  ;;  %v491_v42 = vadd.f32 %v490_v41, %v489_v38  ;;  %v479_v43 = vadd.f32 %v478_v40, %v477_v37 }
 0x132   : > { %v505_v39 = vrot.slane %v504_v36, 2  ;;  %v492_v45 = vrot.slane %v491_v42, 2  ;;  %v480_v46 = vrot.slane %v479_v43, 1 }
 0x134   : > { %v506_v44 = vadd.f32 %v505_v39, %v504_v36  ;;  %v493_v47 = vadd.f32 %v492_v45, %v491_v42  ;;  %v481_v48 = vadd.f32 %v480_v46, %v479_v43 }
 0x136   : > { %v507_v49 = vrot.slane %v506_v44, 1  ;;  %703 = vpush %v481_v48  ;;  %v494_v50 = vrot.slane %v493_v47, 1 }
 0x138   : > { %v495_v51 = vadd.f32 %v494_v50, %v493_v47  ;;  %v508_v52 = vadd.f32 %v507_v49, %v506_v44 }
 0x13a   : > { %705 = vpush %v495_v51 }
 0x13b   : > { %707 = vpush %v508_v52 }
 0x167   : > { %s704_s21 = spop %703 }
 0x168   : > { %v483_v53 = vstv %s704_s21 }
 0x169   : > { %485 = vst.msk [vmem:[%s345_s13] sm:$0x1] %vm484_vm1, %v483_v53 }
 0x16b   : > { %s706_s14 = spop %705 }
 0x16c   : > { %v497_v54 = vstv %s706_s14  ;;  %s708_s27 = spop %707 }
 0x16d   : > { %498 = vst.msk [vmem:[%s348_s30] sm:$0x1] %vm484_vm1, %v497_v54  ;;  %v510_v55 = vstv %s708_s27 }
 0x16e   : > { %511 = vst.msk [vmem:[%s351_s6] sm:$0x1] %vm484_vm1, %v510_v55 }
 0x16f PF: > { %s22_s25 = sadd.s32 1, %s964_s25   ;;  %s1290_s29 = sld [smem:[#allocation12_spill]] }
 0x170   : > { %p19_p8 = scmp.ge.s32.totalorder %s22_s25, 6   ;;  %s1291_s15 = sld [smem:[#allocation13_spill]] }
 0x171   : > { %s1292_s18 = smov %s940_s19  ;;  %s1293_s19 = smov %s944_s20 }
 0x172   : > { %s1294_s20 = smov %s1076_s12  ;;  %s1295_s21 = smov %s956_s23 }
 0x173   : > { %s1296_s22 = smov %s960_s24  ;;  %21 = sbr.rel (!%p19_p8) target bundleno = 10 (0xa), region = 128 }
 0x175   : > { %s1297_s23 = smov %s1290_s29 }
 0x176   : > { %s1298_s24 = smov %s1291_s15 }
 0x178   :  { %553 = vsyncpa [#allocation6], 1 }
 0x179   :  { %555 = vsyncpa [#allocation6 + $0x1], 1 }
 0x17a   :  { %556 = vsyncpa [#allocation8], 1 }
 0x17b   :  { %558 = vsyncpa [#allocation8 + $0x1], 1 }

</bundles_post_ra>
